<compile_context>
chip_gen: v7x
topology: tpu7x:2x2x1
jax: 0.10.0
libtpu: 0.0.40
codegen_flags: <defaults>
</compile_context>

<pallas_src>
import jax
import jax.numpy as jnp
from jax.experimental import pallas as pl
from jax.experimental.pallas import tpu as pltpu


# ---------------------------------------------------------------------------
# Sizes (scaled down from the original 100352/32/1000, structurally identical)
# ---------------------------------------------------------------------------
B = 128      # batch
F = 224      # inception feature dim (original: 100352)
G = 32       # gender DenseLayer width (original: 32)
FP = F + G   # 256 = concat width == rows of w1
H = 128      # fc hidden width        (original: 1000)
TB = 128     # batch tile (full batch -> single grid step; tunable 128-256)


# ---------------------------------------------------------------------------
# Pallas kernel: whole dense head, VMEM-resident per batch tile
# ---------------------------------------------------------------------------
def bonet_head_kernel(x_ref, y_ref, w1_ref, w2_ref, scal_ref, o_ref):
    # Unpack the packed "scalars" slab (one DMA instead of six).
    wg = scal_ref[0:1, :G]       # gender weight row   [1, G]
    bg = scal_ref[1:2, :G]       # gender bias         [1, G]
    b1 = scal_ref[2:3, :]        # fc_1 bias           [1, H]
    b2 = scal_ref[3:4, :]        # fc_2 bias           [1, H]
    b3 = scal_ref[4:5, 0:1]      # fc_3 bias           [1, 1]
    w3 = scal_ref[5:6, :]        # fc_3 weight column  [1, H]

    # Gender branch: Linear(1, G) is an outer-product broadcast, then ReLU.
    g = jnp.maximum(y_ref[...] * wg + bg, 0.0)                    # [TB, G] f32

    # fc_1 over concat([x, g], 1) as an exact split matmul (no lane concat):
    #   cat @ W1 == x @ W1[:F, :] + g @ W1[F:F+G, :]
    h1 = jnp.dot(x_ref[...], w1_ref[:F, :],
                 preferred_element_type=jnp.float32)
    h1 = h1 + jnp.dot(g.astype(jnp.bfloat16), w1_ref[F:, :],
                      preferred_element_type=jnp.float32)
    h1 = jnp.maximum(h1 + b1, 0.0)                                # [TB, H] f32

    # fc_2 + ReLU
    h2 = jnp.dot(h1.astype(jnp.bfloat16), w2_ref[...],
                 preferred_element_type=jnp.float32)
    h2 = jnp.maximum(h2 + b2, 0.0)                                # [TB, H] f32

    # fc_3 (Linear(H, 1), no activation): VPU multiply + lane reduction, then
    # transpose [TB, 1] -> [1, TB] on the idle XLU for a lane-dense store.
    out_col = jnp.sum(h2 * w3, axis=-1, keepdims=True) + b3       # [TB, 1]
    o_ref[...] = out_col.T                                        # [1, TB]


# ---------------------------------------------------------------------------
# One-time parameter preprocessing (hoisted out of the per-call path)
# ---------------------------------------------------------------------------
def prepare_params(params):
    """Cast big weights to bf16 and pack all tiny operands into one (8,H) slab."""
    scal = jnp.zeros((8, H), jnp.float32)
    scal = scal.at[0, :G].set(params["wg"][0])
    scal = scal.at[1, :G].set(params["bg"][0])
    scal = scal.at[2, :].set(params["b1"][0])
    scal = scal.at[3, :].set(params["b2"][0])
    scal = scal.at[4, 0].set(params["b3"][0, 0])
    scal = scal.at[5, :].set(params["w3"][:, 0])
    return {
        "w1": params["w1"].astype(jnp.bfloat16),   # [FP, H]
        "w2": params["w2"].astype(jnp.bfloat16),   # [H, H]
        "scal": scal,                              # [8, H]
    }


# ---------------------------------------------------------------------------
# Wrapper: single grid step at this scale (grid = cdiv(b, TB))
# ---------------------------------------------------------------------------
def bonet_head(x_feat, y, prep):
    b = x_feat.shape[0]
    if x_feat.dtype != jnp.bfloat16:
        # Prefer producing bf16 at the producer (backbone epilogue); this is a
        # fallback so arbitrary callers still work.
        x_feat = x_feat.astype(jnp.bfloat16)

    num_tiles = pl.cdiv(b, TB)
    b_pad = num_tiles * TB
    if b_pad != b:
        # Pad the batch explicitly so every tile is full (padded rows are
        # finite garbage and sliced off below).
        x_feat = jnp.pad(x_feat, ((0, b_pad - b), (0, 0)))
        y = jnp.pad(y, ((0, b_pad - b), (0, 0)))

    flops = 2 * b_pad * (G + F * H + G * H + H * H + H)
    bytes_accessed = (x_feat.size * 2 + y.size * 4 + prep["w1"].size * 2
                      + prep["w2"].size * 2 + prep["scal"].size * 4 + b_pad * 4)

    out = pl.pallas_call(
        bonet_head_kernel,
        out_shape=jax.ShapeDtypeStruct((num_tiles, TB), jnp.float32),
        grid=(num_tiles,),
        in_specs=[
            pl.BlockSpec((TB, F), lambda i: (i, 0)),      # x_feat (bf16)
            pl.BlockSpec((TB, 1), lambda i: (i, 0)),      # y      (f32)
            pl.BlockSpec((FP, H), lambda i: (0, 0)),      # w1     (bf16)
            pl.BlockSpec((H, H), lambda i: (0, 0)),       # w2     (bf16)
            pl.BlockSpec((8, H), lambda i: (0, 0)),       # scalars slab (f32)
        ],
        out_specs=pl.BlockSpec((1, TB), lambda i: (i, 0)),  # lane-dense rows
        compiler_params=pltpu.CompilerParams(
            dimension_semantics=("arbitrary",)),
        cost_estimate=pl.CostEstimate(
            flops=flops, transcendentals=0, bytes_accessed=bytes_accessed),
    )(x_feat, y, prep["w1"], prep["w2"], prep["scal"])

    return out.reshape(-1)[:b, None]                       # (b, 1)


# ---------------------------------------------------------------------------
# Deterministic parameter init (PyTorch-Linear-like; weights stored [in, out])
# ---------------------------------------------------------------------------
def init_params(key):
    ks = jax.random.split(key, 8)

    def lin_w(k, fan_in, fan_out):
        s = 1.0 / jnp.sqrt(jnp.float32(fan_in))
        return jax.random.uniform(k, (fan_in, fan_out), jnp.float32, -s, s)

    def lin_b(k, fan_in, fan_out):
        s = 1.0 / jnp.sqrt(jnp.float32(fan_in))
        return jax.random.uniform(k, (1, fan_out), jnp.float32, -s, s)

    return {
        "wg": lin_w(ks[0], 1, G), "bg": lin_b(ks[1], 1, G),     # gender
        "w1": lin_w(ks[2], FP, H), "b1": lin_b(ks[3], FP, H),   # fc_1 (F+G in)
        "w2": lin_w(ks[4], H, H), "b2": lin_b(ks[5], H, H),     # fc_2
        "w3": lin_w(ks[6], H, 1), "b3": lin_b(ks[7], H, 1),     # fc_3
    }


# ---------------------------------------------------------------------------
# Pure-JAX (f32) reference matching the original module semantics
# ---------------------------------------------------------------------------
def bonet_head_ref(x_feat, y, p):
    g = jnp.maximum(y @ p["wg"] + p["bg"], 0.0)
    cat = jnp.concatenate([x_feat, g], axis=1)
    h1 = jnp.maximum(cat @ p["w1"] + p["b1"], 0.0)
    h2 = jnp.maximum(h1 @ p["w2"] + p["b2"], 0.0)
    return h2 @ p["w3"] + p["b3"]


if __name__ == "__main__":
    key = jax.random.PRNGKey(0)
    k_x, k_y, k_p = jax.random.split(key, 3)

    # x_feat stands in for inception_v3(x) output (backbone not provided).
    x_feat_f32 = jax.random.normal(k_x, (B, F), jnp.float32)
    x_feat = x_feat_f32.astype(jnp.bfloat16)   # producer emits bf16 directly
    y = jax.random.uniform(k_y, (B, 1), jnp.float32)   # "gender" scalar input

    params = init_params(k_p)
    prep = prepare_params(params)   # one-time: bf16 casts + packed scalar slab

    out = jax.block_until_ready(bonet_head(x_feat, y, prep))
    ref = bonet_head_ref(x_feat_f32, y, params)

    assert out.shape == (B, 1), out.shape
    # bf16 weights/activations in the kernel -> tolerance loosened vs f32 ref.
    assert jnp.allclose(out, ref, atol=3e-2, rtol=3e-2), (
        float(jnp.max(jnp.abs(out - ref))))

    print("KERNEL_OK")
</pallas_src>

<mosaic_0001>
module attributes {stable_mosaic.version = 11 : i64} {
  func.func @bonet_head_kernel(%arg0: i32, %arg1: memref<128x224xbf16, #tpu.memory_space<vmem>>, %arg2: memref<128x1xf32, #tpu.memory_space<vmem>>, %arg3: memref<256x128xbf16, #tpu.memory_space<vmem>>, %arg4: memref<128x128xbf16, #tpu.memory_space<vmem>>, %arg5: memref<8x128xf32, #tpu.memory_space<vmem>>, %arg6: memref<1x128xf32, #tpu.memory_space<vmem>>) attributes {dimension_semantics = [#tpu.dimension_semantics<arbitrary>], iteration_bounds = array<i64: 1>, scalar_prefetch = 0 : i64, scratch_operands = 0 : i64, tpu.core_type = #tpu.core_type<tc>, window_params = [{transform_indices = @transform_0, window_bounds = array<i64: 128, 224>}, {transform_indices = @transform_1, window_bounds = array<i64: 128, 1>}, {pipeline_mode = #tpu.pipeline_mode<synchronous>, transform_indices = @transform_2, window_bounds = array<i64: 256, 128>}, {pipeline_mode = #tpu.pipeline_mode<synchronous>, transform_indices = @transform_3, window_bounds = array<i64: 128, 128>}, {pipeline_mode = #tpu.pipeline_mode<synchronous>, transform_indices = @transform_4, window_bounds = array<i64: 8, 128>}, {transform_indices = @transform_5, window_bounds = array<i64: 1, 128>}]} {
    %c0 = arith.constant 0 : index
    %c0_0 = arith.constant 0 : index
    %0 = vector.load %arg5[%c0, %c0_0] : memref<8x128xf32, #tpu.memory_space<vmem>>, vector<1x32xf32>
    %c1 = arith.constant 1 : index
    %c0_1 = arith.constant 0 : index
    %1 = vector.load %arg5[%c1, %c0_1] : memref<8x128xf32, #tpu.memory_space<vmem>>, vector<1x32xf32>
    %c2 = arith.constant 2 : index
    %c0_2 = arith.constant 0 : index
    %2 = vector.load %arg5[%c2, %c0_2] : memref<8x128xf32, #tpu.memory_space<vmem>>, vector<1x128xf32>
    %c3 = arith.constant 3 : index
    %c0_3 = arith.constant 0 : index
    %3 = vector.load %arg5[%c3, %c0_3] : memref<8x128xf32, #tpu.memory_space<vmem>>, vector<1x128xf32>
    %c4 = arith.constant 4 : index
    %c0_4 = arith.constant 0 : index
    %4 = vector.load %arg5[%c4, %c0_4] : memref<8x128xf32, #tpu.memory_space<vmem>>, vector<1x1xf32>
    %c5 = arith.constant 5 : index
    %c0_5 = arith.constant 0 : index
    %5 = vector.load %arg5[%c5, %c0_5] : memref<8x128xf32, #tpu.memory_space<vmem>>, vector<1x128xf32>
    %c0_6 = arith.constant 0 : index
    %c0_7 = arith.constant 0 : index
    %6 = vector.load %arg2[%c0_6, %c0_7] : memref<128x1xf32, #tpu.memory_space<vmem>>, vector<128x1xf32>
    %7 = vector.broadcast %6 : vector<128x1xf32> to vector<128x32xf32>
    %8 = vector.broadcast %0 : vector<1x32xf32> to vector<128x32xf32>
    %9 = arith.mulf %7, %8 : vector<128x32xf32>
    %10 = vector.broadcast %1 : vector<1x32xf32> to vector<128x32xf32>
    %11 = arith.addf %9, %10 : vector<128x32xf32>
    %cst = arith.constant 0.000000e+00 : f32
    %12 = vector.broadcast %cst : f32 to vector<128x32xf32>
    %13 = arith.maximumf %11, %12 : vector<128x32xf32>
    %c0_8 = arith.constant 0 : index
    %c0_9 = arith.constant 0 : index
    %14 = vector.load %arg1[%c0_8, %c0_9] : memref<128x224xbf16, #tpu.memory_space<vmem>>, vector<128x224xbf16>
    %c0_10 = arith.constant 0 : index
    %c0_11 = arith.constant 0 : index
    %15 = vector.load %arg3[%c0_10, %c0_11] : memref<256x128xbf16, #tpu.memory_space<vmem>>, vector<224x128xbf16>
    %cst_12 = arith.constant dense<0.000000e+00> : vector<128x128xf32>
    %16 = tpu.matmul %14, %15, %cst_12 {dimension_numbers = #tpu.dot_dimension_numbers<[1], [0], [0], [1], [0, 0, 1, 1], [], []>} : vector<128x224xbf16>, vector<224x128xbf16>, vector<128x128xf32> -> vector<128x128xf32>
    %17 = arith.truncf %13 : vector<128x32xf32> to vector<128x32xbf16>
    %c224 = arith.constant 224 : index
    %c0_13 = arith.constant 0 : index
    %18 = vector.load %arg3[%c224, %c0_13] : memref<256x128xbf16, #tpu.memory_space<vmem>>, vector<32x128xbf16>
    %cst_14 = arith.constant dense<0.000000e+00> : vector<128x128xf32>
    %19 = tpu.matmul %17, %18, %cst_14 {dimension_numbers = #tpu.dot_dimension_numbers<[1], [0], [0], [1], [0, 0, 1, 1], [], []>} : vector<128x32xbf16>, vector<32x128xbf16>, vector<128x128xf32> -> vector<128x128xf32>
    %20 = arith.addf %16, %19 : vector<128x128xf32>
    %21 = vector.broadcast %2 : vector<1x128xf32> to vector<128x128xf32>
    %22 = arith.addf %20, %21 : vector<128x128xf32>
    %cst_15 = arith.constant 0.000000e+00 : f32
    %23 = vector.broadcast %cst_15 : f32 to vector<128x128xf32>
    %24 = arith.maximumf %22, %23 : vector<128x128xf32>
    %25 = arith.truncf %24 : vector<128x128xf32> to vector<128x128xbf16>
    %c0_16 = arith.constant 0 : index
    %c0_17 = arith.constant 0 : index
    %26 = vector.load %arg4[%c0_16, %c0_17] : memref<128x128xbf16, #tpu.memory_space<vmem>>, vector<128x128xbf16>
    %cst_18 = arith.constant dense<0.000000e+00> : vector<128x128xf32>
    %27 = tpu.matmul %25, %26, %cst_18 {dimension_numbers = #tpu.dot_dimension_numbers<[1], [0], [0], [1], [0, 0, 1, 1], [], []>} : vector<128x128xbf16>, vector<128x128xbf16>, vector<128x128xf32> -> vector<128x128xf32>
    %28 = vector.broadcast %3 : vector<1x128xf32> to vector<128x128xf32>
    %29 = arith.addf %27, %28 : vector<128x128xf32>
    %cst_19 = arith.constant 0.000000e+00 : f32
    %30 = vector.broadcast %cst_19 : f32 to vector<128x128xf32>
    %31 = arith.maximumf %29, %30 : vector<128x128xf32>
    %32 = vector.broadcast %5 : vector<1x128xf32> to vector<128x128xf32>
    %33 = arith.mulf %31, %32 : vector<128x128xf32>
    %cst_20 = arith.constant dense<0.000000e+00> : vector<128xf32>
    %34 = vector.multi_reduction <add>, %33, %cst_20 [1] : vector<128x128xf32> to vector<128xf32>
    %35 = vector.shape_cast %34 : vector<128xf32> to vector<128x1xf32>
    %36 = vector.broadcast %4 : vector<1x1xf32> to vector<128x1xf32>
    %37 = arith.addf %35, %36 : vector<128x1xf32>
    %38 = tpu.transpose %37, [1, 0] : vector<128x1xf32> -> vector<1x128xf32>
    %c0_21 = arith.constant 0 : index
    %c0_22 = arith.constant 0 : index
    %39 = vector.load %arg6[%c0_21, %c0_22] : memref<1x128xf32, #tpu.memory_space<vmem>>, vector<1x128xf32>
    tpu.vector_store %arg6[%c0_21, %c0_22], %38 {strides = array<i32>} : memref<1x128xf32, #tpu.memory_space<vmem>>, vector<1x128xf32>,
    return
  }
  func.func @transform_0(%arg0: i32) -> (i32, i32) {
    %c0_i32 = arith.constant 0 : i32
    %c0_i32_0 = arith.constant 0 : i32
    return %arg0, %c0_i32 : i32, i32
  }
  func.func @transform_1(%arg0: i32) -> (i32, i32) {
    %c0_i32 = arith.constant 0 : i32
    %c0_i32_0 = arith.constant 0 : i32
    return %arg0, %c0_i32 : i32, i32
  }
  func.func @transform_2(%arg0: i32) -> (i32, i32) {
    %c0_i32 = arith.constant 0 : i32
    %c0_i32_0 = arith.constant 0 : i32
    %c0_i32_1 = arith.constant 0 : i32
    return %c0_i32, %c0_i32_0 : i32, i32
  }
  func.func @transform_3(%arg0: i32) -> (i32, i32) {
    %c0_i32 = arith.constant 0 : i32
    %c0_i32_0 = arith.constant 0 : i32
    %c0_i32_1 = arith.constant 0 : i32
    return %c0_i32, %c0_i32_0 : i32, i32
  }
  func.func @transform_4(%arg0: i32) -> (i32, i32) {
    %c0_i32 = arith.constant 0 : i32
    %c0_i32_0 = arith.constant 0 : i32
    %c0_i32_1 = arith.constant 0 : i32
    return %c0_i32, %c0_i32_0 : i32, i32
  }
  func.func @transform_5(%arg0: i32) -> (i32, i32) {
    %c0_i32 = arith.constant 0 : i32
    %c0_i32_0 = arith.constant 0 : i32
    return %arg0, %c0_i32 : i32, i32
  }
}

</mosaic_0001>

<bundles_post_ra>
// kernel: tpu_custom_call.1
= control target key start
LH: loop header
LB: loop body
LE: loop exit
PB: predicated region body
PF: predicated region fallthrough
CT: control target
= control target key end

     0   :  { %v1208_v2 = vmov 0   ;;  %vm526_vm0 = vcmask 785408   ;;  %s1573_s0 = inlined_call_operand.vmem [shape: bf16[128,224], index: 0, kind: input, shape index: {}]   ;;  %s1574_s1 = inlined_call_operand.vmem [shape: f32[128,1], index: 1, kind: input, shape index: {}]   ;;  %s1575_s2 = inlined_call_operand.vmem [shape: bf16[256,128], index: 2, kind: input, shape index: {}]   ;;  %s1576_s3 = inlined_call_operand.vmem [shape: bf16[128,128], index: 3, kind: input, shape index: {}]   ;;  %s1577_s4 = inlined_call_operand.vmem [shape: f32[8,128], index: 4, kind: input, shape index: {}]   ;;  %s1578_s5 = inlined_call_operand.hbm [shape: f32[1,128], index: 5, kind: output, shape index: {}]  }
   0x1   :  { %v30_v0 = vld [vmem:[%s1574_s1 + $0x10] sm:$0xff]  ;;  %v28_v1 = vld [vmem:[%s1574_s1] sm:$0xff]  ;;  %1135 = vset.pattern.permute.xlu1 %v1208_v2  ;;  %1134 = vset.pattern.permute.xlu0 %v1208_v2  ;;  %v31_v3 = vld [vmem:[%s1574_s1 + $0x18] sm:$0xff] }
   0x2   :  { %56 = vperm.xlu1 %1135, %v30_v0   ;;  %46 = vperm.xlu0 %1134, %v28_v1   ;;  %v29_v4 = vld [vmem:[%s1574_s1 + $0x8] sm:$0xff]  ;;  %v1136_v6 = vld [vmem:[%s1575_s2] sm:$0xff]   ;;  %v35_v9 = vld [vmem:[%s1574_s1 + $0x38] sm:$0xff] }
   0x3   :  { %551 = vmatprep.subr.bf16.mxu1 %v1208_v2  ;;  %v33_v5 = vld [vmem:[%s1574_s1 + $0x28] sm:$0xff]  ;;  %v32_v7 = vld [vmem:[%s1574_s1 + $0x20] sm:$0xff]  ;;  %v34_v10 = vld [vmem:[%s1574_s1 + $0x30] sm:$0xff] }
   0x4   :  { %552 = vmatpush1.bf16.msra.mxu1 %v1136_v6  ;;  %v1137_v8 = vld [vmem:[%s1575_s2 + $0x8] sm:$0xff]   ;;  %v1138_v11 = vld [vmem:[%s1575_s2 + $0x10] sm:$0xff]   ;;  %v36_v13 = vld [vmem:[%s1574_s1 + $0x40] sm:$0xff] }
   0x5   :  { %553 = vmatprep.subr.bf16.mxu1 %v1208_v2  ;;  %v37_v12 = vld [vmem:[%s1574_s1 + $0x48] sm:$0xff]  ;;  %v1139_v14 = vld [vmem:[%s1575_s2 + $0x18] sm:$0xff]   ;;  %v38_v16 = vld [vmem:[%s1574_s1 + $0x50] sm:$0xff] }
   0x6   :  { %61 = vperm.xlu1 %1135, %v31_v3   ;;  %51 = vperm.xlu0 %1134, %v29_v4   ;;  %v39_v15 = vld [vmem:[%s1574_s1 + $0x58] sm:$0xff]  ;;  %v1140_v17 = vld [vmem:[%s1575_s2 + $0x20] sm:$0xff]   ;;  %v41_v19 = vld [vmem:[%s1574_s1 + $0x68] sm:$0xff] }
   0x7   :  { %v1152_v18 = vld [vmem:[%s1573_s0 + $0x4] ss:$8 sps:$4 sm:$0xff]   ;;  %v43_v22 = vld [vmem:[%s1574_s1 + $0x78] sm:$0xff]  ;;  %v1161_v23 = vld [vmem:[%s1575_s2 + $0x70] sm:$0xff]  }
   0x8   :  { %554 = vmatpush1.bf16.msra.mxu1 %v1137_v8  ;;  %v40_v20 = vld [vmem:[%s1574_s1 + $0x60] sm:$0xff]  ;;  %1034 = vmatprep.mubr.msk.bf16.mxu1 %vm526_vm0, %v1152_v18  ;;  %v1141_v21 = vld [vmem:[%s1575_s2 + $0x28] sm:$0xff]   ;;  %v42_v24 = vld [vmem:[%s1574_s1 + $0x70] sm:$0xff] }
   0x9   :  { %555 = vmatprep.subr.bf16.mxu1 %v1208_v2  ;;  %1080 = vmatprep.subr.bf16.mxu0 %v1161_v23  ;;  %v1163_v25 = vld [vmem:[%s1575_s2 + $0x78] sm:$0xff]   ;;  %v1142_v26 = vld [vmem:[%s1575_s2 + $0x30] sm:$0xff]   ;;  %v1144_v28 = vld [vmem:[%s1575_s2 + $0x40] sm:$0xff]  }
   0xa   :  { %71 = vperm.xlu1 %1135, %v33_v5   ;;  %66 = vperm.xlu0 %1134, %v32_v7   ;;  %v1143_v27 = vld [vmem:[%s1575_s2 + $0x38] sm:$0xff]  }
   0xb   :  { %1081 = vmatpush3.bf16.msra.mxu0 %v1161_v23 }
   0xc   :  { %556 = vmatpush1.bf16.msra.mxu1 %v1138_v11  ;;  %1082 = vmatprep.subr.bf16.mxu0 %v1163_v25 }
   0xd   :  { %557 = vmatprep.subr.bf16.mxu1 %v1208_v2 }
   0xe   :  { %81 = vperm.xlu1 %1135, %v35_v9   ;;  %76 = vperm.xlu0 %1134, %v34_v10  }
   0xf   :  { %1083 = vmatpush3.bf16.msra.mxu0 %v1163_v25 }
  0x10   :  { %558 = vmatpush1.bf16.msra.mxu1 %v1139_v14 }
  0x11   :  { %559 = vmatprep.subr.bf16.mxu1 %v1208_v2 }
  0x12   :  { %91 = vperm.xlu1 %1135, %v37_v12   ;;  %86 = vperm.xlu0 %1134, %v36_v13  }
  0x14   :  { %560 = vmatpush1.bf16.msra.mxu1 %v1140_v17 }
  0x15   :  { %561 = vmatprep.subr.bf16.mxu1 %v1208_v2 }
  0x16   :  { %101 = vperm.xlu1 %1135, %v39_v15   ;;  %96 = vperm.xlu0 %1134, %v38_v16  }
  0x18   :  { %562 = vmatpush1.bf16.msra.mxu1 %v1141_v21 }
  0x19   :  { %563 = vmatprep.subr.bf16.mxu1 %v1208_v2 }
  0x1a   :  { %111 = vperm.xlu1 %1135, %v41_v19   ;;  %106 = vperm.xlu0 %1134, %v40_v20  }
  0x1c   :  { %564 = vmatpush1.bf16.msra.mxu1 %v1142_v26 }
  0x1d   :  { %565 = vmatprep.subr.bf16.mxu1 %v1208_v2 }
  0x1e   :  { %121 = vperm.xlu1 %1135, %v43_v22   ;;  %116 = vperm.xlu0 %1134, %v42_v24  }
  0x20   :  { %566 = vmatpush1.bf16.msra.mxu1 %v1143_v27 }
  0x21   :  { %567 = vmatprep.subr.bf16.mxu1 %v1208_v2 }
  0x22   :  { %10 = vsyncpa [#allocation3], 0  ;;  %v1339_v29 = vld [vmem:[%s1576_s3] sm:$0xff]   ;;  %v1145_v30 = vld [vmem:[%s1575_s2 + $0x48] sm:$0xff]   ;;  %vm248_vm1 = vcmask 261120  }
  0x23   :  { %1100 = vmatprep.subr.bf16.mxu0 %v1339_v29  ;;  %v1146_v31 = vld [vmem:[%s1575_s2 + $0x50] sm:$0xff]   ;;  %v1147_v32 = vld [vmem:[%s1575_s2 + $0x58] sm:$0xff]   ;;  %v1148_v33 = vld [vmem:[%s1575_s2 + $0x60] sm:$0xff]  }
  0x24   :  { %568 = vmatpush1.bf16.msra.mxu1 %v1144_v28  ;;  %v1149_v34 = vld [vmem:[%s1575_s2 + $0x68] sm:$0xff]   ;;  %v1153_v36 = vld [vmem:[%s1573_s0 + $0x14] ss:$8 sps:$4 sm:$0xff]   ;;  %v1155_v37 = vld [vmem:[%s1573_s0 + $0x10] ss:$8 sps:$4 sm:$0xff]  }
  0x25   :  { %569 = vmatprep.subr.bf16.mxu1 %v1208_v2  ;;  %v1150_v35 = vld [vmem:[%s1573_s0] ss:$8 sps:$4 sm:$0xff]   ;;  %v1156_v38 = vld [vmem:[%s1573_s0 + $0x24] ss:$8 sps:$4 sm:$0xff]   ;;  %v1159_v40 = vld [vmem:[%s1573_s0 + $0x34] ss:$8 sps:$4 sm:$0xff]  }
  0x26   :  { %v1158_v39 = vld [vmem:[%s1573_s0 + $0x20] ss:$8 sps:$4 sm:$0xff]   ;;  %v1162_v41 = vld [vmem:[%s1573_s0 + $0x30] ss:$8 sps:$4 sm:$0xff]   ;;  %v1164_v42 = vld [vmem:[%s1573_s0 + $0x44] ss:$8 sps:$4 sm:$0xff]  }
  0x27   :  { %v1166_v43 = vld [vmem:[%s1573_s0 + $0x40] ss:$8 sps:$4 sm:$0xff]   ;;  %v1167_v44 = vld [vmem:[%s1573_s0 + $0x54] ss:$8 sps:$4 sm:$0xff]   ;;  %v1169_v45 = vld [vmem:[%s1573_s0 + $0x50] ss:$8 sps:$4 sm:$0xff]  }
  0x28   :  { %570 = vmatpush1.bf16.msra.mxu1 %v1145_v30  ;;  %v1170_v46 = vld [vmem:[%s1573_s0 + $0x64] ss:$8 sps:$4 sm:$0xff]   ;;  %v1172_v47 = vld [vmem:[%s1573_s0 + $0x60] ss:$8 sps:$4 sm:$0xff]   ;;  %v1173_v48 = vld [vmem:[%s1573_s0 + $0x74] ss:$8 sps:$4 sm:$0xff]  }
  0x29   :  { %571 = vmatprep.subr.bf16.mxu1 %v1208_v2  ;;  %v1175_v49 = vld [vmem:[%s1573_s0 + $0x70] ss:$8 sps:$4 sm:$0xff]   ;;  %v1417_v50 = vld [vmem:[%s1577_s4] ss:$0 sm:$0xff]  ;;  %v1422_v53 = vld [vmem:[%s1577_s4 + $0x1] ss:$0 sm:$0xff] }
  0x2a   :  { %v1177_v14 = vld [vmem:[%s1576_s3 + $0x8] sm:$0xff]   ;;  %v1178_v28 = vld [vmem:[%s1576_s3 + $0x10] sm:$0xff]  }
  0x2c   :  { %572 = vmatpush1.bf16.msra.mxu1 %v1146_v31 }
  0x2d   :  { %573 = vmatprep.subr.bf16.mxu1 %v1208_v2 }
  0x30   :  { %574 = vmatpush1.bf16.msra.mxu1 %v1147_v32 }
  0x31   :  { %575 = vmatprep.subr.bf16.mxu1 %v1208_v2 }
  0x34   :  { %576 = vmatpush1.bf16.msra.mxu1 %v1148_v33 }
  0x35   :  { %577 = vmatprep.subr.bf16.mxu1 %v1208_v2 }
  0x38   :  { %578 = vmatpush1.bf16.msra.mxu1 %v1149_v34  ;;  %v1179_v34 = vld [vmem:[%s1576_s3 + $0x18] sm:$0xff]  }
  0x3b   :  { %584 = vmatmul.mubr.bf16.vlgmr.msra.gmra.mrb[0].mxu1 %v1150_v35 }
  0x3c   :  { %1035 = vmatprep.mubr.msk.bf16.mxu1 %vm526_vm0, %v1153_v36 }
  0x43   :  { %592 = vmatmul.mubr.bf16.gmra.mrb[4].mxu1 %v1155_v37 }
  0x44   :  { %1036 = vmatprep.mubr.msk.bf16.mxu1 %vm526_vm0, %v1156_v38 }
  0x4b   :  { %600 = vmatmul.mubr.bf16.gmra.mrb[8].mxu1 %v1158_v39 }
  0x4c   :  { %1037 = vmatprep.mubr.msk.bf16.mxu1 %vm526_vm0, %v1159_v40 }
  0x53   :  { %608 = vmatmul.mubr.bf16.gmra.mrb[12].mxu1 %v1162_v41 }
  0x54   :  { %1038 = vmatprep.mubr.msk.bf16.mxu1 %vm526_vm0, %v1164_v42 }
  0x5b   :  { %616 = vmatmul.mubr.bf16.gmra.mrb[16].mxu1 %v1166_v43 }
  0x5c   :  { %1039 = vmatprep.mubr.msk.bf16.mxu1 %vm526_vm0, %v1167_v44 }
  0x63   :  { %624 = vmatmul.mubr.bf16.gmra.mrb[20].mxu1 %v1169_v45 }
  0x64   :  { %1040 = vmatprep.mubr.msk.bf16.mxu1 %vm526_vm0, %v1170_v46 }
  0x6b   :  { %632 = vmatmul.mubr.bf16.gmra.mrb[24].mxu1 %v1172_v47 }
  0x6c   :  { %1041 = vmatprep.mubr.msk.bf16.mxu1 %vm526_vm0, %v1173_v48  ;;  %v1180_v48 = vld [vmem:[%s1576_s3 + $0x20] sm:$0xff]  }
  0x73   :  { %640 = vmatmul.mubr.bf16.gmra.mrb[28].mxu1 %v1175_v49 }
  0x81   :  { %v57_v51 = vpop.permute.xlu1 %56  ;;  %v47_v52 = vpop.permute.xlu0 %46 }
  0x82   :  { %v130_v54 = vmul.f32 %v1417_v50, %v57_v51  ;;  %v128_v55 = vmul.f32 %v1417_v50, %v47_v52 }
  0x84   :  { %v150_v56 = vadd.f32 %v1422_v53, %v130_v54  ;;  %v148_v57 = vadd.f32 %v1422_v53, %v128_v55 }
  0x85   :  { %v62_v58 = vpop.permute.xlu1 %61  ;;  %v52_v59 = vpop.permute.xlu0 %51 }
  0x86   :  { %v131_v60 = vmul.f32 %v1417_v50, %v62_v58  ;;  %v129_v61 = vmul.f32 %v1417_v50, %v52_v59  ;;  %v166_v0 = vmax.f32 %v150_v56, 0.0  ;;  %v164_v1 = vmax.f32 %v148_v57, 0.0 }
  0x88   :  { %v151_v62 = vadd.f32 %v1422_v53, %v131_v60  ;;  %v149_v63 = vadd.f32 %v1422_v53, %v129_v61 }
  0x89   :  { %v72_v2 = vpop.permute.xlu1 %71  ;;  %v67_v3 = vpop.permute.xlu0 %66 }
  0x8a   :  { %v167_v4 = vmax.f32 %v151_v62, 0.0  ;;  %v165_v5 = vmax.f32 %v149_v63, 0.0  ;;  %v133_v6 = vmul.f32 %v1417_v50, %v72_v2  ;;  %v132_v7 = vmul.f32 %v1417_v50, %v67_v3  ;;  %v1181_v2 = vld [vmem:[%s1576_s3 + $0x28] sm:$0xff]  }
  0x8c   :  { %v225_v8 = vpack.c.bf16 %v167_v4, %v166_v0  ;;  %v153_v9 = vadd.f32 %v1422_v53, %v133_v6  ;;  %v152_v10 = vadd.f32 %v1422_v53, %v132_v7  ;;  %v224_v11 = vpack.c.bf16 %v165_v5, %v164_v1 }
  0x8d   :  { %v82_v12 = vpop.permute.xlu1 %81  ;;  %v77_v13 = vpop.permute.xlu0 %76 }
  0x8e   :  { %v169_v15 = vmax.f32 %v153_v9, 0.0  ;;  %v168_v16 = vmax.f32 %v152_v10, 0.0  ;;  %v135_v17 = vmul.f32 %v1417_v50, %v82_v12  ;;  %v134_v18 = vmul.f32 %v1417_v50, %v77_v13  ;;  %1084 = vmatprep.mubr.msk.bf16.mxu0 %vm248_vm1, %v224_v11 }
  0x8f   :  { %1085 = vmatmul.mubr.msk.bf16.vlgmr.msra.gmra.mrb[0].mxu0 %vm248_vm1, %v225_v8 }
  0x90   :  { %v226_v19 = vpack.c.bf16 %v169_v15, %v168_v16  ;;  %v155_v20 = vadd.f32 %v1422_v53, %v135_v17  ;;  %v154_v21 = vadd.f32 %v1422_v53, %v134_v18  ;;  %1101 = vmatpush3.bf16.msra.mxu0 %v1339_v29 }
  0x91   :  { %v92_v22 = vpop.permute.xlu1 %91  ;;  %v87_v23 = vpop.permute.xlu0 %86  ;;  %1102 = vmatprep.subr.bf16.mxu0 %v1177_v14 }
  0x92   :  { %v171_v24 = vmax.f32 %v155_v20, 0.0  ;;  %v170_v25 = vmax.f32 %v154_v21, 0.0  ;;  %v137_v26 = vmul.f32 %v1417_v50, %v92_v22  ;;  %v136_v27 = vmul.f32 %v1417_v50, %v87_v23  ;;  %1088 = vmatprep.mubr.msk.bf16.mxu0 %vm248_vm1, %v226_v19 }
  0x94   :  { %v227_v30 = vpack.c.bf16 %v171_v24, %v170_v25  ;;  %v157_v31 = vadd.f32 %v1422_v53, %v137_v26  ;;  %v156_v29 = vadd.f32 %v1422_v53, %v136_v27  ;;  %1103 = vmatpush3.bf16.msra.mxu0 %v1177_v14 }
  0x95   :  { %v102_v32 = vpop.permute.xlu1 %101  ;;  %v97_v33 = vpop.permute.xlu0 %96  ;;  %1104 = vmatprep.subr.bf16.mxu0 %v1178_v28 }
  0x96   :  { %v173_v35 = vmax.f32 %v157_v31, 0.0  ;;  %v172_v36 = vmax.f32 %v156_v29, 0.0  ;;  %v139_v37 = vmul.f32 %v1417_v50, %v102_v32  ;;  %v138_v38 = vmul.f32 %v1417_v50, %v97_v33 }
  0x97   :  { %1089 = vmatmul.mubr.msk.bf16.gmra.mrb[4].mxu0 %vm248_vm1, %v227_v30 }
  0x98   :  { %v228_v39 = vpack.c.bf16 %v173_v35, %v172_v36  ;;  %v159_v40 = vadd.f32 %v1422_v53, %v139_v37  ;;  %v158_v41 = vadd.f32 %v1422_v53, %v138_v38  ;;  %1105 = vmatpush3.bf16.msra.mxu0 %v1178_v28  ;;  %v1495_v35 = vld [vmem:[%s1577_s4 + $0x2] ss:$0 sm:$0xff] }
  0x99   :  { %v112_v42 = vpop.permute.xlu1 %111  ;;  %v107_v43 = vpop.permute.xlu0 %106  ;;  %1106 = vmatprep.subr.bf16.mxu0 %v1179_v34 }
  0x9a   :  { %v175_v44 = vmax.f32 %v159_v40, 0.0  ;;  %v174_v45 = vmax.f32 %v158_v41, 0.0  ;;  %v141_v46 = vmul.f32 %v1417_v50, %v112_v42  ;;  %v140_v47 = vmul.f32 %v1417_v50, %v107_v43  ;;  %1092 = vmatprep.mubr.msk.bf16.mxu0 %vm248_vm1, %v228_v39 }
  0x9c   :  { %v229_v49 = vpack.c.bf16 %v175_v44, %v174_v45  ;;  %v161_v51 = vadd.f32 %v1422_v53, %v141_v46  ;;  %v160_v52 = vadd.f32 %v1422_v53, %v140_v47  ;;  %1107 = vmatpush3.bf16.msra.mxu0 %v1179_v34 }
  0x9d   :  { %v122_v54 = vpop.permute.xlu1 %121  ;;  %v117_v55 = vpop.permute.xlu0 %116  ;;  %1108 = vmatprep.subr.bf16.mxu0 %v1180_v48 }
  0x9e   :  { %v177_v56 = vmax.f32 %v161_v51, 0.0  ;;  %v176_v57 = vmax.f32 %v160_v52, 0.0  ;;  %v143_v58 = vmul.f32 %v1417_v50, %v122_v54  ;;  %v142_v59 = vmul.f32 %v1417_v50, %v117_v55  ;;  %v1182_v50 = vld [vmem:[%s1576_s3 + $0x30] sm:$0xff]  }
  0x9f   :  { %1093 = vmatmul.mubr.msk.bf16.gmra.mrb[8].mxu0 %vm248_vm1, %v229_v49 }
  0xa0   :  { %v230_v60 = vpack.c.bf16 %v177_v56, %v176_v57  ;;  %v163_v61 = vadd.f32 %v1422_v53, %v143_v58  ;;  %v162_v62 = vadd.f32 %v1422_v53, %v142_v59  ;;  %1109 = vmatpush3.bf16.msra.mxu0 %v1180_v48  ;;  %v1183_v53 = vld [vmem:[%s1576_s3 + $0x38] sm:$0xff]  }
  0xa1   :  { %1110 = vmatprep.subr.bf16.mxu0 %v1181_v2 }
  0xa2   :  { %v179_v63 = vmax.f32 %v163_v61, 0.0  ;;  %v178_v0 = vmax.f32 %v162_v62, 0.0  ;;  %1096 = vmatprep.mubr.msk.bf16.mxu0 %vm248_vm1, %v230_v60 }
  0xa4   :  { %v231_v1 = vpack.c.bf16 %v179_v63, %v178_v0  ;;  %1111 = vmatpush3.bf16.msra.mxu0 %v1181_v2 }
  0xa5   :  { %1112 = vmatprep.subr.bf16.mxu0 %v1182_v50 }
  0xa7   :  { %1097 = vmatmul.mubr.msk.bf16.gmra.mrb[12].mxu0 %vm248_vm1, %v231_v1 }
  0xa8   :  { %1113 = vmatpush3.bf16.msra.mxu0 %v1182_v50 }
  0xa9   :  { %1114 = vmatprep.subr.bf16.mxu0 %v1183_v53 }
  0xac   :  { %1115 = vmatpush3.bf16.msra.mxu0 %v1183_v53 }
 0x10e   :  { %v585_v3 = vpop.f32.mrb[0].mxu1 }
 0x10f   :  { %v587_v4 = vpop.f32.mrb[1].mxu1 }
 0x110   :  { %v588_v5 = vpop.f32.mrb[2].mxu1 }
 0x111   :  { %v590_v6 = vpop.f32.mrb[3].mxu1 }
 0x116   :  { %v593_v7 = vpop.f32.mrb[4].mxu1 }
 0x117   :  { %v595_v8 = vpop.f32.mrb[5].mxu1 }
 0x118   :  { %v596_v9 = vpop.f32.mrb[6].mxu1 }
 0x119   :  { %v598_v10 = vpop.f32.mrb[7].mxu1 }
 0x11e   :  { %v601_v11 = vpop.f32.mrb[8].mxu1 }
 0x11f   :  { %v603_v12 = vpop.f32.mrb[9].mxu1 }
 0x120   :  { %v604_v13 = vpop.f32.mrb[10].mxu1 }
 0x121   :  { %v606_v14 = vpop.f32.mrb[11].mxu1 }
 0x126   :  { %v609_v15 = vpop.f32.mrb[12].mxu1 }
 0x127   :  { %v611_v16 = vpop.f32.mrb[13].mxu1 }
 0x128   :  { %v612_v17 = vpop.f32.mrb[14].mxu1 }
 0x129   :  { %v614_v18 = vpop.f32.mrb[15].mxu1 }
 0x12e   :  { %v617_v19 = vpop.f32.mrb[16].mxu1 }
 0x12f   :  { %v619_v20 = vpop.f32.mrb[17].mxu1 }
 0x130   :  { %v620_v21 = vpop.f32.mrb[18].mxu1 }
 0x131   :  { %v622_v22 = vpop.f32.mrb[19].mxu1 }
 0x136   :  { %v625_v23 = vpop.f32.mrb[20].mxu1 }
 0x137   :  { %v627_v24 = vpop.f32.mrb[21].mxu1 }
 0x138   :  { %v628_v25 = vpop.f32.mrb[22].mxu1 }
 0x139   :  { %v630_v26 = vpop.f32.mrb[23].mxu1 }
 0x13e   :  { %v1486_v27 = vpop.f32.mrb[24].mxu1 }
 0x13f   :  { %v635_v28 = vpop.f32.mrb[25].mxu1 }
 0x140   :  { %v1488_v30 = vpop.f32.mrb[26].mxu1 }
 0x141   :  { %v638_v31 = vpop.f32.mrb[27].mxu1 }
 0x146   :  { %v641_v29 = vpop.f32.mrb[28].mxu1 }
 0x147   :  { %v643_v32 = vpop.f32.mrb[29].mxu1 }
 0x148   :  { %v1490_v33 = vpop.f32.mrb[30].mxu1 }
 0x149   :  { %v646_v34 = vpop.f32.mrb[31].mxu1 }
 0x162   :  { %v1086_v36 = vpop.f32.mrb[0].mxu0 }
 0x163   :  { %v594_v37 = vadd.f32 %v1086_v36, %v593_v7  ;;  %v307_v38 = vpop.f32.mrb[1].mxu0 }
 0x164   :  { %v586_v39 = vadd.f32 %v585_v3, %v307_v38  ;;  %v1087_v40 = vpop.f32.mrb[2].mxu0 }
 0x165   :  { %v654_v41 = vadd.f32 %v1495_v35, %v594_v37  ;;  %v597_v42 = vadd.f32 %v1087_v40, %v596_v9  ;;  %v310_v43 = vpop.f32.mrb[3].mxu0 }
 0x166   :  { %v652_v44 = vadd.f32 %v1495_v35, %v586_v39  ;;  %v589_v45 = vadd.f32 %v588_v5, %v310_v43 }
 0x167   :  { %v655_v46 = vadd.f32 %v1495_v35, %v597_v42  ;;  %v670_v48 = vmax.f32 %v654_v41, 0.0 }
 0x168   :  { %v653_v47 = vadd.f32 %v1495_v35, %v589_v45  ;;  %v668_v51 = vmax.f32 %v652_v44, 0.0 }
 0x169   :  { %v671_v49 = vmax.f32 %v655_v46, 0.0 }
 0x16a   :  { %v669_v52 = vmax.f32 %v653_v47, 0.0  ;;  %v1090_v54 = vpop.f32.mrb[4].mxu0 }
 0x16b   :  { %v685_v55 = vpack.c.bf16 %v671_v49, %v670_v48  ;;  %v610_v56 = vadd.f32 %v1090_v54, %v609_v15  ;;  %v323_v57 = vpop.f32.mrb[5].mxu0 }
 0x16c   :  { %v602_v58 = vadd.f32 %v601_v11, %v323_v57  ;;  %v1091_v59 = vpop.f32.mrb[6].mxu0  ;;  %v684_v60 = vpack.c.bf16 %v669_v52, %v668_v51  ;;  %v1526_v52 = vld [vmem:[%s1577_s4 + $0x5] ss:$0 sm:$0xff] }
 0x16d   :  { %v658_v61 = vadd.f32 %v1495_v35, %v610_v56  ;;  %v613_v62 = vadd.f32 %v1091_v59, %v612_v17  ;;  %v326_v63 = vpop.f32.mrb[7].mxu0 }
 0x16e   :  { %v656_v0 = vadd.f32 %v1495_v35, %v602_v58  ;;  %v605_v1 = vadd.f32 %v604_v13, %v326_v63  ;;  %1116 = vmatprep.mubr.bf16.mxu0 %v684_v60 }
 0x16f   :  { %v659_v2 = vadd.f32 %v1495_v35, %v613_v62  ;;  %1117 = vmatmul.mubr.bf16.vlgmr.msra.gmra.mrb[16].mxu0 %v685_v55  ;;  %v674_v53 = vmax.f32 %v658_v61, 0.0 }
 0x170   :  { %v657_v50 = vadd.f32 %v1495_v35, %v605_v1  ;;  %v672_v4 = vmax.f32 %v656_v0, 0.0 }
 0x171   :  { %v675_v3 = vmax.f32 %v659_v2, 0.0 }
 0x172   :  { %v673_v5 = vmax.f32 %v657_v50, 0.0  ;;  %v1094_v6 = vpop.f32.mrb[8].mxu0 }
 0x173   :  { %v626_v7 = vadd.f32 %v1094_v6, %v625_v23  ;;  %v339_v8 = vpop.f32.mrb[9].mxu0  ;;  %v687_v9 = vpack.c.bf16 %v675_v3, %v674_v53 }
 0x174   :  { %v618_v10 = vadd.f32 %v617_v19, %v339_v8  ;;  %v1095_v11 = vpop.f32.mrb[10].mxu0  ;;  %v686_v12 = vpack.c.bf16 %v673_v5, %v672_v4 }
 0x175   :  { %v662_v14 = vadd.f32 %v1495_v35, %v626_v7  ;;  %v629_v13 = vadd.f32 %v1095_v11, %v628_v25  ;;  %v342_v15 = vpop.f32.mrb[11].mxu0 }
 0x176   :  { %v660_v16 = vadd.f32 %v1495_v35, %v618_v10  ;;  %v621_v17 = vadd.f32 %v620_v21, %v342_v15  ;;  %1120 = vmatprep.mubr.bf16.mxu0 %v686_v12 }
 0x177   :  { %v663_v18 = vadd.f32 %v1495_v35, %v629_v13  ;;  %1121 = vmatmul.mubr.bf16.gmra.mrb[20].mxu0 %v687_v9  ;;  %v678_v22 = vmax.f32 %v662_v14, 0.0 }
 0x178   :  { %v661_v20 = vadd.f32 %v1495_v35, %v621_v17  ;;  %v676_v24 = vmax.f32 %v660_v16, 0.0 }
 0x179   :  { %v679_v23 = vmax.f32 %v663_v18, 0.0 }
 0x17a   :  { %v677_v26 = vmax.f32 %v661_v20, 0.0  ;;  %v1098_v19 = vpop.f32.mrb[12].mxu0 }
 0x17b   :  { %v642_v28 = vadd.f32 %v1098_v19, %v641_v29  ;;  %v355_v31 = vpop.f32.mrb[13].mxu0  ;;  %v689_v32 = vpack.c.bf16 %v679_v23, %v678_v22 }
 0x17c   :  { %v634_v25 = vadd.f32 %v1486_v27, %v355_v31  ;;  %v1099_v34 = vpop.f32.mrb[14].mxu0  ;;  %v688_v36 = vpack.c.bf16 %v677_v26, %v676_v24 }
 0x17d   :  { %v666_v21 = vadd.f32 %v1495_v35, %v642_v28  ;;  %v645_v37 = vadd.f32 %v1099_v34, %v1490_v33  ;;  %v358_v38 = vpop.f32.mrb[15].mxu0  ;;  %v1519_v33 = vld [vmem:[%s1577_s4 + $0x3] ss:$0 sm:$0xff] }
 0x17e   :  { %v664_v39 = vadd.f32 %v1495_v35, %v634_v25  ;;  %v637_v40 = vadd.f32 %v1488_v30, %v358_v38  ;;  %1124 = vmatprep.mubr.bf16.mxu0 %v688_v36 }
 0x17f   :  { %v667_v41 = vadd.f32 %v1495_v35, %v645_v37  ;;  %1125 = vmatmul.mubr.bf16.gmra.mrb[24].mxu0 %v689_v32  ;;  %v682_v42 = vmax.f32 %v666_v21, 0.0 }
 0x180   :  { %v665_v29 = vadd.f32 %v1495_v35, %v637_v40  ;;  %v680_v27 = vmax.f32 %v664_v39, 0.0 }
 0x181   :  { %v683_v43 = vmax.f32 %v667_v41, 0.0 }
 0x182   :  { %v681_v44 = vmax.f32 %v665_v29, 0.0 }
 0x183   :  { %v691_v45 = vpack.c.bf16 %v683_v43, %v682_v42 }
 0x184   :  { %v690_v46 = vpack.c.bf16 %v681_v44, %v680_v27 }
 0x186   :  { %1128 = vmatprep.mubr.bf16.mxu0 %v690_v46 }
 0x187   :  { %1129 = vmatmul.mubr.bf16.gmra.mrb[28].mxu0 %v691_v45 }
 0x242   :  { %v1118_v30 = vpop.f32.mrb[16].mxu0 }
 0x243   :  { %v794_v47 = vpop.f32.mrb[17].mxu0  ;;  %v803_v48 = vadd.f32 %v1118_v30, %v1519_v33 }
 0x244   :  { %v795_v49 = vadd.f32 %v1519_v33, %v794_v47  ;;  %v1119_v35 = vpop.f32.mrb[18].mxu0 }
 0x245   :  { %v797_v51 = vpop.f32.mrb[19].mxu0  ;;  %v859_v56 = vmax.f32 %v803_v48, 0.0  ;;  %v806_v57 = vadd.f32 %v1119_v35, %v1519_v33  ;;  %v1053_v48 = vld [vmem:[%s1577_s4 + $0x4] ss:$0 sm:$0xff]  ;;  %s1209_s4 = smov [#allocation2]  }
 0x246   :  { %v857_v54 = vmax.f32 %v795_v49, 0.0  ;;  %v798_v55 = vadd.f32 %v1519_v33, %v797_v51  ;;  %s984_s10 = sshll.u32 %s1209_s4, 4  ;;  %s985_s10 = int_to_ptr.vmem [resolvable:$true] %s984_s10 }
 0x247   :  { %v860_v0 = vmax.f32 %v806_v57, 0.0  ;;  %v879_v50 = vmul.f32 %v1526_v52, %v859_v56  ;;  %s1184_s11 = scalar_lea.vmem %s985_s10, 16  ;;  %s1188_s12 = scalar_lea.vmem %s985_s10, 32 }
 0x248   :  { %v858_v58 = vmax.f32 %v798_v55, 0.0  ;;  %v877_v59 = vmul.f32 %v1526_v52, %v857_v54  ;;  %p1185_p0 = scmp.ne.s32.totalorder %s985_s10, %s1184_s11  ;;  %p1189_p1 = scmp.lt.s32.totalorder %s985_s10, %s985_s10 }
 0x249   :  { %v880_v9 = vmul.f32 %v1526_v52, %v860_v0  ;;  %p1190_p2 = scmp.lt.s32.totalorder %s1188_s12, %s1184_s11 }
 0x24a   :  { %v1122_v60 = vpop.f32.mrb[20].mxu0  ;;  %893 = vadd.xlane.f32.xlu0 %v877_v59  ;;  %v878_v61 = vmul.f32 %v1526_v52, %v858_v58 }
 0x24b   :  { %v819_v62 = vadd.f32 %v1122_v60, %v1519_v33  ;;  %v810_v63 = vpop.f32.mrb[21].mxu0  ;;  %p1191_p3 = por %p1190_p2, %p1189_p1 }
 0x24c   :  { %v811_v1 = vadd.f32 %v1519_v33, %v810_v63  ;;  %v1123_v2 = vpop.f32.mrb[22].mxu0  ;;  %895 = vadd.xlane.f32.xlu1 %v878_v61 }
 0x24d   :  { %v863_v53 = vmax.f32 %v819_v62, 0.0  ;;  %v813_v3 = vpop.f32.mrb[23].mxu0  ;;  %v822_v7 = vadd.f32 %v1123_v2, %v1519_v33  ;;  %p1192_p4 = pnand %p1191_p3, %p1185_p0 }
 0x24e   :  { %v814_v4 = vadd.f32 %v1519_v33, %v813_v3  ;;  %897 = vadd.xlane.f32.xlu0 %v879_v50  ;;  %v861_v5 = vmax.f32 %v811_v1, 0.0 }
 0x24f   :  { %v883_v6 = vmul.f32 %v1526_v52, %v863_v53  ;;  %v864_v13 = vmax.f32 %v822_v7, 0.0 }
 0x250   :  { %v862_v8 = vmax.f32 %v814_v4, 0.0  ;;  %v881_v14 = vmul.f32 %v1526_v52, %v861_v5 }
 0x251   :  { %905 = vadd.xlane.f32.xlu1 %v883_v6  ;;  %v884_v28 = vmul.f32 %v1526_v52, %v864_v13 }
 0x252   :  { %v1126_v10 = vpop.f32.mrb[24].mxu0  ;;  %899 = vadd.xlane.f32.xlu0 %v880_v9  ;;  %v882_v17 = vmul.f32 %v1526_v52, %v862_v8 }
 0x253   :  { %v835_v11 = vadd.f32 %v1126_v10, %v1519_v33  ;;  %v826_v12 = vpop.f32.mrb[25].mxu0 }
 0x254   :  { %v827_v15 = vadd.f32 %v1519_v33, %v826_v12  ;;  %v1127_v16 = vpop.f32.mrb[26].mxu0 }
 0x255   :  { %v867_v18 = vmax.f32 %v835_v11, 0.0  ;;  %v829_v20 = vpop.f32.mrb[27].mxu0  ;;  %901 = vadd.xlane.f32.xlu1 %v881_v14  ;;  %v838_v26 = vadd.f32 %v1127_v16, %v1519_v33 }
 0x256   :  { %v830_v22 = vadd.f32 %v1519_v33, %v829_v20  ;;  %903 = vadd.xlane.f32.xlu0 %v882_v17  ;;  %v865_v23 = vmax.f32 %v827_v15, 0.0 }
 0x257   :  { %v887_v24 = vmul.f32 %v1526_v52, %v867_v18  ;;  %v868_v36 = vmax.f32 %v838_v26, 0.0 }
 0x258   :  { %v866_v19 = vmax.f32 %v830_v22, 0.0  ;;  %v885_v34 = vmul.f32 %v1526_v52, %v865_v23 }
 0x259   :  { %913 = vadd.xlane.f32.xlu1 %v887_v24  ;;  %v888_v44 = vmul.f32 %v1526_v52, %v868_v36 }
 0x25a   :  { %907 = vadd.xlane.f32.xlu0 %v884_v28  ;;  %v1130_v31 = vpop.f32.mrb[28].mxu0  ;;  %v886_v38 = vmul.f32 %v1526_v52, %v866_v19 }
 0x25b   :  { %v851_v32 = vadd.f32 %v1130_v31, %v1519_v33  ;;  %v842_v25 = vpop.f32.mrb[29].mxu0 }
 0x25c   :  { %v843_v21 = vadd.f32 %v1519_v33, %v842_v25  ;;  %v1131_v37 = vpop.f32.mrb[30].mxu0 }
 0x25d   :  { %v871_v39 = vmax.f32 %v851_v32, 0.0  ;;  %909 = vadd.xlane.f32.xlu1 %v885_v34  ;;  %v845_v40 = vpop.f32.mrb[31].mxu0  ;;  %v854_v43 = vadd.f32 %v1131_v37, %v1519_v33 }
 0x25e   :  { %v846_v41 = vadd.f32 %v1519_v33, %v845_v40  ;;  %911 = vadd.xlane.f32.xlu0 %v886_v38  ;;  %v869_v29 = vmax.f32 %v843_v21, 0.0 }
 0x25f   :  { %v891_v42 = vmul.f32 %v1526_v52, %v871_v39  ;;  %v872_v46 = vmax.f32 %v854_v43, 0.0 }
 0x260   :  { %v870_v27 = vmax.f32 %v846_v41, 0.0  ;;  %v889_v45 = vmul.f32 %v1526_v52, %v869_v29 }
 0x261   :  { %921 = vadd.xlane.f32.xlu1 %v891_v42  ;;  %v892_v47 = vmul.f32 %v1526_v52, %v872_v46 }
 0x262   :  { %915 = vadd.xlane.f32.xlu0 %v888_v44  ;;  %v890_v30 = vmul.f32 %v1526_v52, %v870_v27 }
 0x265   :  { %917 = vadd.xlane.f32.xlu1 %v889_v45 }
 0x266   :  { %919 = vadd.xlane.f32.xlu0 %v890_v30 }
 0x26a   :  { %923 = vadd.xlane.f32.xlu0 %v892_v47 }
 0x2d7   :  { %v894_v33 = vpop.xlane.xlu0 %893 }
 0x2d8   :  { %v929_v49 = vadd.f32 %v1053_v48, %v894_v33 }
 0x2d9   :  { %v896_v35 = vpop.xlane.xlu1 %895 }
 0x2da   :  { %945 = vxpose.xlu1.b32.start [1/16] (narrow) %v929_v49, 8  ;;  %v930_v54 = vadd.f32 %v1053_v48, %v896_v35 }
 0x2db   :  { %v898_v51 = vpop.xlane.xlu0 %897 }
 0x2dc   :  { %v931_v56 = vadd.f32 %v1053_v48, %v898_v51 }
 0x2de   :  { %946 = vxpose.xlu1.b32.cont [2/16] (narrow) %v930_v54, 8  ;;  %v906_v55 = vpop.xlane.xlu1 %905 }
 0x2df   :  { %v900_v57 = vpop.xlane.xlu0 %899  ;;  %v935_v63 = vadd.f32 %v1053_v48, %v906_v55 }
 0x2e0   :  { %v932_v58 = vadd.f32 %v1053_v48, %v900_v57 }
 0x2e2   :  { %947 = vxpose.xlu1.b32.cont [3/16] (narrow) %v931_v56, 8  ;;  %v902_v59 = vpop.xlane.xlu1 %901 }
 0x2e3   :  { %v933_v52 = vadd.f32 %v1053_v48, %v902_v59  ;;  %v904_v60 = vpop.xlane.xlu0 %903 }
 0x2e4   :  { %v934_v61 = vadd.f32 %v1053_v48, %v904_v60 }
 0x2e6   :  { %948 = vxpose.xlu1.b32.cont [4/16] (narrow) %v932_v58, 8  ;;  %v914_v62 = vpop.xlane.xlu1 %913 }
 0x2e7   :  { %v908_v0 = vpop.xlane.xlu0 %907  ;;  %v939_v5 = vadd.f32 %v1053_v48, %v914_v62 }
 0x2e8   :  { %v936_v1 = vadd.f32 %v1053_v48, %v908_v0 }
 0x2ea   :  { %949 = vxpose.xlu1.b32.cont [5/16] (narrow) %v933_v52, 8  ;;  %v910_v2 = vpop.xlane.xlu1 %909 }
 0x2eb   :  { %v937_v50 = vadd.f32 %v1053_v48, %v910_v2  ;;  %v912_v53 = vpop.xlane.xlu0 %911 }
 0x2ec   :  { %v938_v3 = vadd.f32 %v1053_v48, %v912_v53 }
 0x2ee   :  { %950 = vxpose.xlu1.b32.cont [6/16] (narrow) %v934_v61, 8  ;;  %v922_v4 = vpop.xlane.xlu1 %921 }
 0x2ef   :  { %v916_v6 = vpop.xlane.xlu0 %915  ;;  %v943_v12 = vadd.f32 %v1053_v48, %v922_v4 }
 0x2f0   :  { %v940_v7 = vadd.f32 %v1053_v48, %v916_v6 }
 0x2f2   :  { %951 = vxpose.xlu1.b32.cont [7/16] (narrow) %v935_v63, 8  ;;  %v918_v8 = vpop.xlane.xlu1 %917 }
 0x2f3   :  { %v941_v9 = vadd.f32 %v1053_v48, %v918_v8  ;;  %v920_v10 = vpop.xlane.xlu0 %919 }
 0x2f4   :  { %v942_v11 = vadd.f32 %v1053_v48, %v920_v10 }
 0x2f6   :  { %952 = vxpose.xlu1.b32.cont [8/16] (narrow) %v936_v1, 8 }
 0x2f7   :  { %v924_v14 = vpop.xlane.xlu0 %923 }
 0x2f8   :  { %v944_v13 = vadd.f32 %v1053_v48, %v924_v14 }
 0x2fa   :  { %953 = vxpose.xlu1.b32.cont [9/16] (narrow) %v937_v50, 8 }
 0x2fe   :  { %954 = vxpose.xlu1.b32.cont [10/16] (narrow) %v938_v3, 8 }
 0x302   :  { %955 = vxpose.xlu1.b32.cont [11/16] (narrow) %v939_v5, 8 }
 0x306   :  { %956 = vxpose.xlu1.b32.cont [12/16] (narrow) %v940_v7, 8 }
 0x30a   :  { %957 = vxpose.xlu1.b32.cont [13/16] (narrow) %v941_v9, 8 }
 0x30e   :  { %958 = vxpose.xlu1.b32.cont [14/16] (narrow) %v942_v11, 8 }
 0x312   :  { %959 = vxpose.xlu1.b32.cont [15/16] (narrow) %v943_v12, 8 }
 0x316   :  { %960 = vxpose.xlu1.b32.end [16/16] (narrow) %v944_v13, 8 }
 0x35a   :  { %v961_v15 = vpop.trf.xlu1 }
 0x35b   :  { %977 = vst [vmem:[#allocation2] sm:$0x1] %v961_v15 }
 0x35c   :  { %1195 = shalt.err (!%p1192_p4)
}
 0x35d   :  { %s1196_s15 = scalar_lea.hbm %s1578_s5, 16 }
 0x35e   :  { %p1197_p5 = scmp.ne.s32.totalorder %s1578_s5, %s1196_s15  ;;  %p1200_p6 = scmp.lt.u32.totalorder %s1196_s15, %s1578_s5 }
 0x360   :  { %p1202_p7 = pnand %p1200_p6, %p1197_p5 }
 0x362   :  { %1205 = shalt.err (!%p1202_p7)
}
 0x363   :  { %987 = dma.vmem_to_hbm [thread:$0]  %s985_s10, 16, %s1578_s5, [#allocation3]  }
 0x364   :  { %1206 = dma.done.wait [#allocation3], 16  }
 0x365   :  { %1207 = vsyncadd [#allocation3], 4294967280 }
 0x366   :  { %991 = vsyncpa [#allocation3], 1 }

</bundles_post_ra>
